<compile_context>
chip_gen: v6e
topology: v6e:2x2x1
jax: 0.10.0
libtpu: 0.0.40
codegen_flags: <defaults>
</compile_context>

<pallas_src>
import functools
import math

import jax
import jax.numpy as jnp
from jax.experimental import pallas as pl
from jax.experimental.pallas import tpu as pltpu


_VMEM_LIMIT = 32 * 1024 * 1024  # safe on v5e/v6e/v7x with the tile caps below


def _largest_divisor(dim, cap, quantum=8):
    """Largest divisor of `dim` that is <= cap and a multiple of `quantum`.

    Falls back to the full dim (always a legal BlockSpec block) when dim <= cap
    or no such divisor exists.
    """
    if dim <= cap:
        return dim
    d = (cap // quantum) * quantum
    while d >= quantum:
        if dim % d == 0:
            return d
        d -= quantum
    return dim


# ----------------------------------------------------------------------------
# Tiled linear:  y = x @ W + b   (fp32 accumulation, bias added once)
# ----------------------------------------------------------------------------
def _linear_kernel(x_ref, w_ref, b_ref, o_ref, acc_ref):
    k = pl.program_id(2)

    @pl.when(k == 0)
    def _init():
        acc_ref[...] = jnp.zeros_like(acc_ref)

    acc_ref[...] += jnp.dot(x_ref[...], w_ref[...],
                            preferred_element_type=jnp.float32)

    @pl.when(k == pl.num_programs(2) - 1)
    def _finalize():
        o_ref[...] = (acc_ref[...] + b_ref[...].astype(jnp.float32)
                      ).astype(o_ref.dtype)


def _linear(x, w, b, *, out_dtype=None):
    """y = x @ w + b with x:(M,K), w:(K,N), b:(N,)."""
    M, K = x.shape
    _, N = w.shape
    out_dtype = out_dtype or x.dtype

    # Row tiling: pad M up to a 256 multiple rather than using a giant
    # full-M block (keeps double-buffering alive and VMEM bounded).
    if M <= 256:
        tm, Mp = M, M
    elif M % 256 == 0:
        tm, Mp = 256, M
    else:
        tm = 256
        Mp = ((M + tm - 1) // tm) * tm
        x = jnp.pad(x, ((0, Mp - M), (0, 0)))

    # N / K tiling: hidden dims are normally multiples of 128.
    # TODO(synk): pad + mask N/K for exotic non-128-multiple hidden sizes.
    tn = _largest_divisor(N, 256, quantum=128)
    tk = _largest_divisor(K, 512, quantum=128)

    b2 = b.reshape(1, N)

    out = pl.pallas_call(
        _linear_kernel,
        out_shape=jax.ShapeDtypeStruct((Mp, N), out_dtype),
        grid_spec=pltpu.PrefetchScalarGridSpec(
            num_scalar_prefetch=0,
            grid=(Mp // tm, N // tn, K // tk),
            in_specs=[
                pl.BlockSpec((tm, tk), lambda i, j, k: (i, k)),   # x tile
                pl.BlockSpec((tk, tn), lambda i, j, k: (k, j)),   # W tile
                pl.BlockSpec((1, tn), lambda i, j, k: (0, j)),    # bias tile
            ],
            out_specs=pl.BlockSpec((tm, tn), lambda i, j, k: (i, j)),
            scratch_shapes=[pltpu.VMEM((tm, tn), jnp.float32)],
        ),
        compiler_params=pltpu.CompilerParams(
            dimension_semantics=("parallel", "parallel", "arbitrary"),
            vmem_limit_bytes=_VMEM_LIMIT),
        cost_estimate=pl.CostEstimate(
            flops=2 * Mp * N * K,
            transcendentals=0,
            bytes_accessed=4 * (Mp * K + K * N + Mp * N)),
    )(x, w, b2)

    return out[:M] if Mp != M else out


# ----------------------------------------------------------------------------
# Flash-style attention core (online softmax over KV tiles, fp32 state)
# ----------------------------------------------------------------------------
def _flash_attn_kernel(q_ref, k_ref, v_ref, o_ref, m_sc, l_sc, acc_sc, *,
                       scale):
    # q_ref: (tq, D)   k_ref / v_ref: (tkv, D)   o_ref: (tq, D)
    # m_sc/l_sc: (tq, 1) f32   acc_sc: (tq, D) f32
    ki = pl.program_id(3)

    @pl.when(ki == 0)
    def _init():
        m_sc[...] = jnp.full_like(m_sc, -jnp.inf)
        l_sc[...] = jnp.zeros_like(l_sc)
        acc_sc[...] = jnp.zeros_like(acc_sc)

    # Fold the combined (head_dim**-0.5 / layer_scaling) scale into q once per
    # tile (tq*D multiplies) instead of scaling the (tq, tkv) score matrix.
    q = q_ref[...] * scale

    # scores = q @ k^T  (MXU, fp32 accumulation; no explicit operand upcast)
    s = jax.lax.dot_general(
        q, k_ref[...], (((1,), (1,)), ((), ())),
        preferred_element_type=jnp.float32)

    m_prev = m_sc[...]
    m_new = jnp.maximum(m_prev, jnp.max(s, axis=-1, keepdims=True))
    alpha = jnp.exp(m_prev - m_new)                 # rescale of old state
    p = jnp.exp(s - m_new)                          # fp32 softmax numerator

    l_sc[...] = alpha * l_sc[...] + jnp.sum(p, axis=-1, keepdims=True)
    acc_sc[...] = alpha * acc_sc[...] + jnp.dot(
        p.astype(v_ref.dtype), v_ref[...], preferred_element_type=jnp.float32)
    m_sc[...] = m_new

    @pl.when(ki == pl.num_programs(3) - 1)
    def _finalize():
        inv_l = pl.reciprocal(l_sc[...], approx=True)   # EUP slot, not VALU
        o_ref[...] = (acc_sc[...] * inv_l).astype(o_ref.dtype)


def _mha(q, k, v, *, scale):
    """q: (B, H, S, D), k/v: (B, Hkv, S, D)  ->  (B, H, S, D)."""
    B, H, S, D = q.shape
    Hkv = k.shape[1]
    group = H // Hkv                      # GQA repeat factor (static)

    # Conservative tiles (re-derived for v7x's 64 MiB VMEM; also fine on
    # v5e's 16 MiB scoped default).
    tq = _largest_divisor(S, 256)
    tkv = _largest_divisor(S, 512)

    kernel = functools.partial(_flash_attn_kernel, scale=scale)

    return pl.pallas_call(
        kernel,
        out_shape=jax.ShapeDtypeStruct((B, H, S, D), q.dtype),
        grid_spec=pltpu.PrefetchScalarGridSpec(
            num_scalar_prefetch=0,
            grid=(B, H, S // tq, S // tkv),
            in_specs=[
                pl.BlockSpec((None, None, tq, D),
                             lambda b, h, qi, ki: (b, h, qi, 0)),
                pl.BlockSpec((None, None, tkv, D),
                             lambda b, h, qi, ki: (b, h // group, ki, 0)),
                pl.BlockSpec((None, None, tkv, D),
                             lambda b, h, qi, ki: (b, h // group, ki, 0)),
            ],
            out_specs=pl.BlockSpec((None, None, tq, D),
                                   lambda b, h, qi, ki: (b, h, qi, 0)),
            scratch_shapes=[
                pltpu.VMEM((tq, 1), jnp.float32),    # running max m
                pltpu.VMEM((tq, 1), jnp.float32),    # running sum l
                pltpu.VMEM((tq, D), jnp.float32),    # fp32 output accumulator
            ],
        ),
        compiler_params=pltpu.CompilerParams(
            dimension_semantics=("parallel", "parallel", "parallel",
                                 "arbitrary"),
            vmem_limit_bytes=_VMEM_LIMIT),
        cost_estimate=pl.CostEstimate(
            flops=4 * B * H * S * S * D,
            transcendentals=B * H * S * S,
            bytes_accessed=4 * (2 * B * H * S * D + 2 * B * Hkv * S * D)),
    )(q, k, v)


# ----------------------------------------------------------------------------
# Parameter fusion (done ONCE at setup time, not per forward call)
# ----------------------------------------------------------------------------
def fuse_qkv_params(wq, bq, wk, bk, wv, bv):
    """Concatenate Q/K/V projection params once so the forward does a single
    fused matmul without re-reading the weights through HBM for a concat."""
    w_qkv = jnp.concatenate([wq, wk, wv], axis=1)
    b_qkv = jnp.concatenate([bq, bk, bv], axis=0)
    return w_qkv, b_qkv


# ----------------------------------------------------------------------------
# Full MegatronAttention forward
# ----------------------------------------------------------------------------
def megatron_attention(hidden_states, w_qkv, b_qkv, wd, bd, *,
                       num_heads, num_kv_heads, layer_scaling=1.0):
    """hidden_states: (B, S, H).  w_qkv: (H, H + 2*kv_dim) pre-fused."""
    B, S, Hd = hidden_states.shape
    head_dim = Hd // num_heads
    kv_dim = num_kv_heads * head_dim
    M = B * S

    x2d = hidden_states.reshape(M, Hd)

    # Fused QKV projection: one pass over x instead of three.
    qkv = _linear(x2d, w_qkv, b_qkv)

    q = qkv[:, :Hd].reshape(B, S, num_heads, head_dim).transpose(0, 2, 1, 3)
    k = qkv[:, Hd:Hd + kv_dim].reshape(
        B, S, num_kv_heads, head_dim).transpose(0, 2, 1, 3)
    v = qkv[:, Hd + kv_dim:].reshape(
        B, S, num_kv_heads, head_dim).transpose(0, 2, 1, 3)

    # scores / layer_scaling * head_dim**-0.5 folded into a single q scale
    scale = (head_dim ** -0.5) / layer_scaling
    ctx = _mha(q, k, v, scale=scale)                 # (B, H, S, D)

    ctx2d = ctx.transpose(0, 2, 1, 3).reshape(M, Hd)

    # Output projection.
    out = _linear(ctx2d, wd, bd)
    return out.reshape(B, S, Hd)


# ----------------------------------------------------------------------------
# Test
# ----------------------------------------------------------------------------
if __name__ == "__main__":
    # Small config consistent with MegatronAttention
    batch, seq, hidden = 2, 8, 32
    num_heads, num_kv_heads = 4, 2          # exercises GQA repeat_interleave
    head_dim = hidden // num_heads
    kv_dim = num_kv_heads * head_dim
    layer_number = 2
    layer_scaling = math.sqrt(layer_number)  # apply_query_key_layer_scaling

    key = jax.random.PRNGKey(0)
    ks = jax.random.split(key, 9)
    std = 0.02

    x = jax.random.normal(ks[0], (batch, seq, hidden), dtype=jnp.float32)
    wq = std * jax.random.normal(ks[1], (hidden, hidden), dtype=jnp.float32)
    bq = std * jax.random.normal(ks[2], (hidden,), dtype=jnp.float32)
    wk = std * jax.random.normal(ks[3], (hidden, kv_dim), dtype=jnp.float32)
    bk = std * jax.random.normal(ks[4], (kv_dim,), dtype=jnp.float32)
    wv = std * jax.random.normal(ks[5], (hidden, kv_dim), dtype=jnp.float32)
    bv = std * jax.random.normal(ks[6], (kv_dim,), dtype=jnp.float32)
    wd = std * jax.random.normal(ks[7], (hidden, hidden), dtype=jnp.float32)
    bd = std * jax.random.normal(ks[8], (hidden,), dtype=jnp.float32)

    # One-time parameter fusion (mirrors doing it at module init time).
    w_qkv, b_qkv = fuse_qkv_params(wq, bq, wk, bk, wv, bv)

    out = megatron_attention(x, w_qkv, b_qkv, wd, bd,
                             num_heads=num_heads,
                             num_kv_heads=num_kv_heads,
                             layer_scaling=layer_scaling)
    out = jax.block_until_ready(out)

    # Plain-JAX reference mirroring the torch module
    x2 = x.reshape(-1, hidden)
    qr = (x2 @ wq + bq).reshape(batch, seq, num_heads, head_dim).transpose(0, 2, 1, 3)
    kr = (x2 @ wk + bk).reshape(batch, seq, num_kv_heads, head_dim).transpose(0, 2, 1, 3)
    vr = (x2 @ wv + bv).reshape(batch, seq, num_kv_heads, head_dim).transpose(0, 2, 1, 3)
    rep = num_heads // num_kv_heads
    kr = jnp.repeat(kr, rep, axis=1)
    vr = jnp.repeat(vr, rep, axis=1)
    scores = jnp.einsum('bhqd,bhkd->bhqk', qr, kr) / layer_scaling
    scores = scores * (head_dim ** -0.5)
    probs = jax.nn.softmax(scores.astype(jnp.float32), axis=-1).astype(scores.dtype)
    ctx_r = jnp.einsum('bhqk,bhkd->bhqd', probs, vr)
    ctx_r = ctx_r.transpose(0, 2, 1, 3).reshape(-1, hidden)
    out_r = (ctx_r @ wd + bd).reshape(batch, seq, hidden)

    assert jnp.allclose(out, out_r, atol=1e-4, rtol=1e-4), "mismatch vs reference"
    print("KERNEL_OK")
</pallas_src>

<mosaic_0001>
module attributes {stable_mosaic.version = 11 : i64} {
  func.func @_linear_kernel(%arg0: i32, %arg1: i32, %arg2: i32, %arg3: memref<16x32xf32, #tpu.memory_space<vmem>>, %arg4: memref<32x64xf32, #tpu.memory_space<vmem>>, %arg5: memref<1x64xf32, #tpu.memory_space<vmem>>, %arg6: memref<16x64xf32, #tpu.memory_space<vmem>>, %arg7: memref<16x64xf32, #tpu.memory_space<vmem>>) attributes {dimension_semantics = [#tpu.dimension_semantics<parallel>, #tpu.dimension_semantics<parallel>, #tpu.dimension_semantics<arbitrary>], iteration_bounds = array<i64: 1, 1, 1>, scalar_prefetch = 0 : i64, scratch_operands = 1 : i64, tpu.core_type = #tpu.core_type<tc>, window_params = [{transform_indices = @transform_0, window_bounds = array<i64: 16, 32>}, {transform_indices = @transform_1, window_bounds = array<i64: 32, 64>}, {transform_indices = @transform_2, window_bounds = array<i64: 1, 64>}, {transform_indices = @transform_3, window_bounds = array<i64: 16, 64>}]} {
    %c0_i32 = arith.constant 0 : i32
    %0 = arith.cmpi eq, %arg2, %c0_i32 : i32
    %1 = arith.extui %0 : i1 to i32
    %c0_i32_0 = arith.constant 0 : i32
    %2 = arith.cmpi ne, %1, %c0_i32_0 : i32
    scf.if %2 {
      %cst_10 = arith.constant 0.000000e+00 : f32
      %12 = vector.broadcast %cst_10 : f32 to vector<16x64xf32>
      %c0_11 = arith.constant 0 : index
      %c0_12 = arith.constant 0 : index
      %13 = vector.load %arg7[%c0_11, %c0_12] : memref<16x64xf32, #tpu.memory_space<vmem>>, vector<16x64xf32>
      tpu.vector_store %arg7[%c0_11, %c0_12], %12 {strides = array<i32>} : memref<16x64xf32, #tpu.memory_space<vmem>>, vector<16x64xf32>,
    } else {
    }
    %c0 = arith.constant 0 : index
    %c0_1 = arith.constant 0 : index
    %3 = vector.load %arg7[%c0, %c0_1] : memref<16x64xf32, #tpu.memory_space<vmem>>, vector<16x64xf32>
    %c0_2 = arith.constant 0 : index
    %c0_3 = arith.constant 0 : index
    %4 = vector.load %arg3[%c0_2, %c0_3] : memref<16x32xf32, #tpu.memory_space<vmem>>, vector<16x32xf32>
    %c0_4 = arith.constant 0 : index
    %c0_5 = arith.constant 0 : index
    %5 = vector.load %arg4[%c0_4, %c0_5] : memref<32x64xf32, #tpu.memory_space<vmem>>, vector<32x64xf32>
    %cst = arith.constant dense<0.000000e+00> : vector<16x64xf32>
    %6 = tpu.matmul %4, %5, %cst {dimension_numbers = #tpu.dot_dimension_numbers<[1], [0], [0], [1], [0, 0, 1, 1], [], []>} : vector<16x32xf32>, vector<32x64xf32>, vector<16x64xf32> -> vector<16x64xf32>
    %7 = arith.addf %3, %6 : vector<16x64xf32>
    %c0_6 = arith.constant 0 : index
    %c0_7 = arith.constant 0 : index
    %8 = vector.load %arg7[%c0_6, %c0_7] : memref<16x64xf32, #tpu.memory_space<vmem>>, vector<16x64xf32>
    tpu.vector_store %arg7[%c0_6, %c0_7], %7 {strides = array<i32>} : memref<16x64xf32, #tpu.memory_space<vmem>>, vector<16x64xf32>,
    %c0_i32_8 = arith.constant 0 : i32
    %9 = arith.cmpi eq, %arg2, %c0_i32_8 : i32
    %10 = arith.extui %9 : i1 to i32
    %c0_i32_9 = arith.constant 0 : i32
    %11 = arith.cmpi ne, %10, %c0_i32_9 : i32
    scf.if %11 {
      %c0_10 = arith.constant 0 : index
      %c0_11 = arith.constant 0 : index
      %12 = vector.load %arg7[%c0_10, %c0_11] : memref<16x64xf32, #tpu.memory_space<vmem>>, vector<16x64xf32>
      %c0_12 = arith.constant 0 : index
      %c0_13 = arith.constant 0 : index
      %13 = vector.load %arg5[%c0_12, %c0_13] : memref<1x64xf32, #tpu.memory_space<vmem>>, vector<1x64xf32>
      %14 = vector.broadcast %13 : vector<1x64xf32> to vector<16x64xf32>
      %15 = arith.addf %12, %14 : vector<16x64xf32>
      %c0_14 = arith.constant 0 : index
      %c0_15 = arith.constant 0 : index
      %16 = vector.load %arg6[%c0_14, %c0_15] : memref<16x64xf32, #tpu.memory_space<vmem>>, vector<16x64xf32>
      tpu.vector_store %arg6[%c0_14, %c0_15], %15 {strides = array<i32>} : memref<16x64xf32, #tpu.memory_space<vmem>>, vector<16x64xf32>,
    } else {
    }
    return
  }
  func.func @transform_0(%arg0: i32, %arg1: i32, %arg2: i32) -> (i32, i32) {
    %c0_i32 = arith.constant 0 : i32
    return %arg0, %arg2 : i32, i32
  }
  func.func @transform_1(%arg0: i32, %arg1: i32, %arg2: i32) -> (i32, i32) {
    %c0_i32 = arith.constant 0 : i32
    return %arg2, %arg1 : i32, i32
  }
  func.func @transform_2(%arg0: i32, %arg1: i32, %arg2: i32) -> (i32, i32) {
    %c0_i32 = arith.constant 0 : i32
    %c0_i32_0 = arith.constant 0 : i32
    return %c0_i32, %arg1 : i32, i32
  }
  func.func @transform_3(%arg0: i32, %arg1: i32, %arg2: i32) -> (i32, i32) {
    %c0_i32 = arith.constant 0 : i32
    return %arg0, %arg1 : i32, i32
  }
}

</mosaic_0001>

<bundles_post_ra>
// kernel: tpu_custom_call.1
= control target key start
LH: loop header
LB: loop body
LE: loop exit
PB: predicated region body
PF: predicated region fallthrough
CT: control target
= control target key end

     0   :  { %8 = vsyncpa [#allocation4], 0  ;;  %s326_s0 = inlined_call_operand.hbm [shape: f32[16,32], index: 0, kind: input, shape index: {}]   ;;  %s327_s1 = inlined_call_operand.hbm [shape: f32[32,64], index: 1, kind: input, shape index: {}]   ;;  %s328_s2 = inlined_call_operand.vmem [shape: f32[1,64], index: 2, kind: input, shape index: {}]   ;;  %s329_s3 = inlined_call_operand.hbm [shape: f32[16,64], index: 3, kind: output, shape index: {}]  }
   0x1   :  { %9 = vsyncpa [#allocation7], 0 }
   0x2   :  { %10 = vsyncpa [#allocation5], 0  ;;  %s271_s12 = smov [#allocation3]  }
   0x3   :  { %s16_s13 = sshll.u32 %s271_s12, 4  ;;  %s17_s13 = int_to_ptr.vmem [resolvable:$true] %s16_s13 }
   0x4   :  { %s213_s14 = scalar_lea.vmem %s17_s13, 256  ;;  %p218_p1 = scmp.lt.s32.totalorder %s17_s13, %s17_s13 }
   0x5   :  { %p214_p0 = scmp.ne.s32.totalorder %s17_s13, %s213_s14  ;;  %p219_p2 = scmp.lt.s32.totalorder %s213_s14, %s213_s14 }
   0x7   :  { %p220_p3 = por %p219_p2, %p218_p1 }
   0x9   :  { %p221_p4 = pnand %p220_p3, %p214_p0 }
   0xb   :  { %224 = shalt.err (!%p221_p4)
}
   0xc   :  { %s272_s15 = smov 128   ;;  %s273_s16 = smov 8  }
   0xd   :  { %22 = dma.hbm_to_vmem [thread:$0]  %s326_s0, 256, %s17_s13, [#allocation4], %s272_s15, %s272_s15, %s273_s16  }
   0xe   :  { %s274_s19 = smov [#allocation6]  }
   0xf   :  { %s28_s20 = sshll.u32 %s274_s19, 4  ;;  %s29_s20 = int_to_ptr.vmem [resolvable:$true] %s28_s20 }
  0x10   :  { %s233_s21 = scalar_lea.vmem %s29_s20, 512  ;;  %p238_p6 = scmp.lt.s32.totalorder %s29_s20, %s29_s20 }
  0x11   :  { %p234_p5 = scmp.ne.s32.totalorder %s29_s20, %s233_s21  ;;  %p239_p7 = scmp.lt.s32.totalorder %s233_s21, %s233_s21 }
  0x13   :  { %p240_p8 = por %p239_p7, %p238_p6 }
  0x15   :  { %p241_p9 = pnand %p240_p8, %p234_p5 }
  0x17   :  { %244 = shalt.err (!%p241_p9)
}
  0x18   :  { %34 = dma.hbm_to_vmem [thread:$0]  %s327_s1, 512, %s29_s20, [#allocation7], %s272_s15, %s272_s15, %s273_s16  }
  0x19   :  { %265 = dma.done.wait [#allocation4], 256  }
  0x1a   :  { %266 = vsyncadd [#allocation4], 4294967040 }
  0x1b   :  { %267 = dma.done.wait [#allocation7], 512  }
  0x1c   :  { %268 = vsyncadd [#allocation7], 4294966784  ;;  %vm47_vm0 = vcmask 523264   ;;  %v275_v0 = vmov 0.0   ;;  %vm58_vm1 = vcmask 261120   ;;  %v57_v1 = vld [vmem:[#allocation6 + $0x18] sm:$0xff] }
  0x1d   :  { %49 = vst.msk [vmem:[#allocation2 + $0x8] sm:$0xff] %vm47_vm0, %v275_v0  ;;  %48 = vst.msk [vmem:[#allocation2] sm:$0xff] %vm47_vm0, %v275_v0  ;;  %v56_v2 = vld [vmem:[#allocation6 + $0x10] sm:$0xff]  ;;  %188 = vmatprep.subr.mxu0 %v57_v1  ;;  %v55_v4 = vld [vmem:[#allocation6 + $0x8] sm:$0xff]  ;;  %s276_s24 = smov [#allocation8]  }
  0x1e   :  { %v52_v3 = vld [vmem:[#allocation3] sm:$0xff]  ;;  %189 = vmatpush3.msra.mxu0 %v57_v1  ;;  %v54_v5 = vld [vmem:[#allocation6] sm:$0xff]  ;;  %v53_v6 = vld [vmem:[#allocation3 + $0x8] sm:$0xff]  ;;  %s166_s25 = sshll.u32 %s276_s24, 4  ;;  %s167_s25 = int_to_ptr.vmem [resolvable:$true] %s166_s25 }
  0x1f   :  { %196 = vmatprep.mubr.msk.f32.mxu0 %vm58_vm1, %v52_v3  ;;  %190 = vmatprep.subr.mxu0 %v56_v2  ;;  %v181_v13 = vld [vmem:[%s328_s2] ss:$0 sm:$0xff]  ;;  %s245_s26 = scalar_lea.vmem %s167_s25, 256  ;;  %p250_p11 = scmp.lt.s32.totalorder %s167_s25, %s167_s25 }
  0x20   :  { %191 = vmatpush3.msra.mxu0 %v56_v2  ;;  %p246_p10 = scmp.ne.s32.totalorder %s167_s25, %s245_s26  ;;  %p251_p12 = scmp.lt.s32.totalorder %s245_s26, %s245_s26 }
  0x21   :  { %192 = vmatprep.subr.mxu0 %v55_v4 }
  0x22   :  { %193 = vmatpush3.msra.mxu0 %v55_v4  ;;  %p252_p13 = por %p251_p12, %p250_p11 }
  0x23   :  { %194 = vmatprep.subr.mxu0 %v54_v5 }
  0x24   :  { %195 = vmatpush3.msra.mxu0 %v54_v5  ;;  %v51_v7 = vld [vmem:[#allocation2 + $0x8] sm:$0xff]  ;;  %v50_v9 = vld [vmem:[#allocation2] sm:$0xff]  ;;  %p253_p0 = pnand %p252_p13, %p246_p10 }
  0x25   :  { %197 = vmatmul.mubr.msk.f32.vlgmr.msra.gmra.mxu0 %vm58_vm1, %v53_v6 }
  0xe5   :  { %v198_v8 = vpop.f32.mrf.mxu0 }
  0xe6   :  { %v141_v10 = vadd.f32 %v198_v8, %v51_v7 }
  0xe7   :  { %v131_v11 = vpop.f32.mrf.mxu0 }
  0xe8   :  { %144 = vst.msk [vmem:[#allocation2 + $0x8] sm:$0xff] %vm47_vm0, %v141_v10  ;;  %v140_v12 = vadd.f32 %v131_v11, %v50_v9 }
  0xea   :  { %143 = vst.msk [vmem:[#allocation2] sm:$0xff] %vm47_vm0, %v140_v12 }
  0xef   :  { %v149_v14 = vld [vmem:[#allocation2 + $0x8] sm:$0xff] }
  0xf0   :  { %v158_v15 = vadd.f32 %v181_v13, %v149_v14 }
  0xf1   :  { %v148_v16 = vld [vmem:[#allocation2] sm:$0xff] }
  0xf2   :  { %v157_v17 = vadd.f32 %v181_v13, %v148_v16  ;;  %160 = vst.msk [vmem:[#allocation8 + $0x8] sm:$0xff] %vm47_vm0, %v158_v15 }
  0xf4   :  { %159 = vst.msk [vmem:[#allocation8] sm:$0xff] %vm47_vm0, %v157_v17 }
  0xf5   :  { %256 = shalt.err (!%p253_p0)
}
  0xf6   :  { %172 = dma.vmem_to_hbm [thread:$0]  %s167_s25, 256, %s329_s3, [#allocation5], %s272_s15, %s272_s15, %s273_s16  }
  0xf7   :  { %269 = dma.done.wait [#allocation5], 256  }
  0xf8   :  { %270 = vsyncadd [#allocation5], 4294967040 }
  0xf9   :  { %176 = vsyncpa [#allocation4], 1 }
  0xfa   :  { %177 = vsyncpa [#allocation7], 1 }
  0xfb   :  { %178 = vsyncpa [#allocation5], 1 }

</bundles_post_ra>
